<compile_context>
chip_gen: v7x
topology: tpu7x:2x2x1
jax: 0.10.0
libtpu: 0.0.40
codegen_flags: <defaults>
</compile_context>

<pallas_src>
import functools

import jax
import jax.numpy as jnp
from jax.experimental import pallas as pl
from jax.experimental.pallas import tpu as pltpu


def _mhpconv_kernel(feat_ref, w_ref, b_ref, out_ref):
    """feat_ref: (C*V, tl); w_ref: (C_out*V, C*V); b_ref: (C_out*V, 1) f32;
    out_ref: (C_out*V, tl).  One MXU GEMM + broadcast bias add per tile."""
    y = jnp.dot(w_ref[...], feat_ref[...], preferred_element_type=jnp.float32)
    out_ref[...] = (y + b_ref[...]).astype(out_ref.dtype)


def mhpconv_forward(adj, feat, w_conv, b_conv, diffusion_steps, alpha,
                    tl=1024, mxu_dtype=None):
    """adj:(V,V); feat:(N,C,V,L) NCHW; w_conv:(C_out, C*(K+1),1,1); b_conv:(C_out,)."""
    N, C, V, L = feat.shape
    C_out = w_conv.shape[0]
    K = diffusion_steps
    out_dtype = feat.dtype
    mxu_dtype = feat.dtype if mxu_dtype is None else mxu_dtype

    # The dense folded operator (C_out*V, C*V) must stay VMEM-resident.
    # TODO(synk): block-structured / per-channel operator path for large C*V
    # (e.g. V~200, C~32), where the dense Kronecker fold no longer fits in VMEM.
    assert C * V <= 2048 and C_out * V <= 2048, (
        "dense folded operator too large for VMEM-resident GEMM; blocked path needed")

    # ---- Hoisted once-per-call preprocessing (tiny V/C-sized, done in f32). ----
    a = adj.astype(jnp.float32) + jnp.eye(V, dtype=jnp.float32)
    a = a / jnp.sum(a, axis=1, keepdims=True)              # row-normalize (adj + I)
    p_node = (1.0 - alpha) * a.T                           # h_k = alpha*x + p_node @ h_{k-1}

    w2 = w_conv.reshape(C_out, (K + 1) * C).astype(jnp.float32)
    eye_v = jnp.eye(V, dtype=jnp.float32)
    m_k = eye_v                                            # m_0 = I      (h_0 = x)
    w_total = jnp.kron(w2[:, :C], m_k)
    for k in range(1, K + 1):
        m_k = alpha * eye_v + p_node @ m_k                 # h_k = m_k @ x
        w_total = w_total + jnp.kron(w2[:, k * C:(k + 1) * C], m_k)
    bias2 = jnp.repeat(b_conv.astype(jnp.float32), V)[:, None]   # (C_out*V, 1), f32

    w_total = w_total.astype(mxu_dtype)                    # (C_out*V, C*V)

    # Free contiguous reshape (no transpose, no extra HBM pass): (N, C*V, L),
    # time on the 128-lane axis.
    feat2 = feat.reshape(N, C * V, L).astype(mxu_dtype)

    # ---- Time tiling: tl is a multiple of 128; pad L so every store is unmasked.
    tl = max(128, min(int(tl), L))
    tl = ((tl + 127) // 128) * 128
    L_pad = ((L + tl - 1) // tl) * tl
    if L_pad != L:
        feat2 = jnp.pad(feat2, ((0, 0), (0, 0), (0, L_pad - L)))

    # Generation-aware VMEM budget (double-buffered tiles + resident operator);
    # cap below v7x's 64 MiB physical VMEM.
    in_size = jnp.dtype(mxu_dtype).itemsize
    out_size = jnp.dtype(out_dtype).itemsize
    vmem_est = (2 * C * V * tl * in_size                   # double-buffered feat tile
                + 2 * C_out * V * tl * out_size            # double-buffered out tile
                + C_out * V * C * V * in_size              # resident W_total
                + C_out * V * 4)                           # bias
    vmem_limit = int(min(48 * 1024 * 1024, max(16 * 1024 * 1024, 2 * vmem_est)))

    out = pl.pallas_call(
        _mhpconv_kernel,
        out_shape=jax.ShapeDtypeStruct((N, C_out * V, L_pad), out_dtype),
        grid_spec=pltpu.PrefetchScalarGridSpec(
            num_scalar_prefetch=0,
            grid=(N, L_pad // tl),
            in_specs=[
                # feat tile: rows = C*V (sublane), lanes = time tile (mult of 128).
                pl.BlockSpec((None, C * V, tl), lambda n, li: (n, 0, li)),
                pl.BlockSpec((C_out * V, C * V), lambda n, li: (0, 0)),   # W_total
                pl.BlockSpec((C_out * V, 1), lambda n, li: (0, 0)),       # bias
            ],
            out_specs=pl.BlockSpec((None, C_out * V, tl), lambda n, li: (n, 0, li)),
        ),
        compiler_params=pltpu.CompilerParams(
            dimension_semantics=("parallel", "parallel"),
            vmem_limit_bytes=vmem_limit,
        ),
    )(feat2, w_total, bias2)

    if L_pad != L:
        out = out[:, :, :L]
    return out.reshape(N, C_out, V, L)


def mhpconv_reference(adj, feat, w_conv, b_conv, diffusion_steps, alpha):
    """Pure-JAX reference mirroring the PyTorch forward exactly."""
    V = adj.shape[0]
    a = adj + jnp.eye(V, dtype=adj.dtype)
    a = a / jnp.sum(a, axis=1, keepdims=True)
    h = feat
    outs = [h]
    for _ in range(diffusion_steps):
        h_msg = jnp.einsum('ncvl,vw->ncwl', h, a)
        h = alpha * feat + (1.0 - alpha) * h_msg
        outs.append(h)
    ho = jnp.concatenate(outs, axis=1)
    w2 = w_conv.reshape(w_conv.shape[0], -1)
    y = jnp.einsum('ncvl,oc->novl', ho, w2) + b_conv.reshape(1, -1, 1, 1)
    return y


if __name__ == "__main__":
    # Small shapes consistent with the module.  L = 640 (5 * 128) with tl = 256
    # exercises both the lane-dense multi-step grid (grid = (2, 3)) and the
    # time-axis padding path (L_pad = 768).
    N, C_in, V, L = 2, 4, 16, 640
    C_out = 8
    diffusion_steps = 2
    alpha = 0.05

    key = jax.random.PRNGKey(0)
    k_adj, k_feat, k_w, k_b = jax.random.split(key, 4)

    adj = jax.random.uniform(k_adj, (V, V), dtype=jnp.float32)
    feat = jax.random.normal(k_feat, (N, C_in, V, L), dtype=jnp.float32)
    # Synthetic Conv2d(1x1) params (shapes match nn.Conv2d).
    w_conv = jax.random.normal(
        k_w, (C_out, C_in * (diffusion_steps + 1), 1, 1), dtype=jnp.float32) * 0.1
    b_conv = jax.random.normal(k_b, (C_out,), dtype=jnp.float32) * 0.1

    y = mhpconv_forward(adj, feat, w_conv, b_conv, diffusion_steps, alpha, tl=256)
    y = jax.block_until_ready(y)

    y_ref = mhpconv_reference(adj, feat, w_conv, b_conv, diffusion_steps, alpha)
    assert y.shape == (N, C_out, V, L), y.shape
    assert jnp.allclose(y, y_ref, rtol=5e-4, atol=5e-4), \
        float(jnp.max(jnp.abs(y - y_ref)))

    print("KERNEL_OK")
</pallas_src>

<mosaic_0001>
module attributes {stable_mosaic.version = 11 : i64} {
  func.func @_mhpconv_kernel(%arg0: i32, %arg1: i32, %arg2: memref<1x64x256xf32, #tpu.memory_space<vmem>>, %arg3: memref<128x64xf32, #tpu.memory_space<vmem>>, %arg4: memref<128x1xf32, #tpu.memory_space<vmem>>, %arg5: memref<1x128x256xf32, #tpu.memory_space<vmem>>) attributes {dimension_semantics = [#tpu.dimension_semantics<parallel>, #tpu.dimension_semantics<parallel>], iteration_bounds = array<i64: 2, 3>, scalar_prefetch = 0 : i64, scratch_operands = 0 : i64, tpu.core_type = #tpu.core_type<tc>, window_params = [{transform_indices = @transform_0, window_bounds = array<i64: 1, 64, 256>}, {pipeline_mode = #tpu.pipeline_mode<synchronous>, transform_indices = @transform_1, window_bounds = array<i64: 128, 64>}, {pipeline_mode = #tpu.pipeline_mode<synchronous>, transform_indices = @transform_2, window_bounds = array<i64: 128, 1>}, {transform_indices = @transform_3, window_bounds = array<i64: 1, 128, 256>}]} {
    %c0 = arith.constant 0 : index
    %c0_0 = arith.constant 0 : index
    %0 = vector.load %arg3[%c0, %c0_0] : memref<128x64xf32, #tpu.memory_space<vmem>>, vector<128x64xf32>
    %c0_1 = arith.constant 0 : index
    %c0_2 = arith.constant 0 : index
    %c0_3 = arith.constant 0 : index
    %1 = vector.load %arg2[%c0_1, %c0_2, %c0_3] : memref<1x64x256xf32, #tpu.memory_space<vmem>>, vector<1x64x256xf32>
    %2 = vector.shape_cast %1 : vector<1x64x256xf32> to vector<64x256xf32>
    %cst = arith.constant dense<0.000000e+00> : vector<128x256xf32>
    %3 = tpu.matmul %0, %2, %cst {dimension_numbers = #tpu.dot_dimension_numbers<[1], [0], [0], [1], [0, 0, 1, 1], [], []>} : vector<128x64xf32>, vector<64x256xf32>, vector<128x256xf32> -> vector<128x256xf32>
    %c0_4 = arith.constant 0 : index
    %c0_5 = arith.constant 0 : index
    %4 = vector.load %arg4[%c0_4, %c0_5] : memref<128x1xf32, #tpu.memory_space<vmem>>, vector<128x1xf32>
    %5 = vector.broadcast %4 : vector<128x1xf32> to vector<128x256xf32>
    %6 = arith.addf %3, %5 : vector<128x256xf32>
    %c0_6 = arith.constant 0 : index
    %c0_7 = arith.constant 0 : index
    %c0_8 = arith.constant 0 : index
    %7 = vector.load %arg5[%c0_6, %c0_7, %c0_8] : memref<1x128x256xf32, #tpu.memory_space<vmem>>, vector<1x128x256xf32>
    %8 = vector.shape_cast %7 : vector<1x128x256xf32> to vector<128x256xf32>
    %9 = vector.shape_cast %6 : vector<128x256xf32> to vector<1x128x256xf32>
    tpu.vector_store %arg5[%c0_6, %c0_7, %c0_8], %9 {strides = array<i32>} : memref<1x128x256xf32, #tpu.memory_space<vmem>>, vector<1x128x256xf32>,
    return
  }
  func.func @transform_0(%arg0: i32, %arg1: i32) -> (i32, i32, i32) {
    %c0_i32 = arith.constant 0 : i32
    %c0_i32_0 = arith.constant 0 : i32
    return %arg0, %c0_i32, %arg1 : i32, i32, i32
  }
  func.func @transform_1(%arg0: i32, %arg1: i32) -> (i32, i32) {
    %c0_i32 = arith.constant 0 : i32
    %c0_i32_0 = arith.constant 0 : i32
    %c0_i32_1 = arith.constant 0 : i32
    return %c0_i32, %c0_i32_0 : i32, i32
  }
  func.func @transform_2(%arg0: i32, %arg1: i32) -> (i32, i32) {
    %c0_i32 = arith.constant 0 : i32
    %c0_i32_0 = arith.constant 0 : i32
    %c0_i32_1 = arith.constant 0 : i32
    return %c0_i32, %c0_i32_0 : i32, i32
  }
  func.func @transform_3(%arg0: i32, %arg1: i32) -> (i32, i32, i32) {
    %c0_i32 = arith.constant 0 : i32
    %c0_i32_0 = arith.constant 0 : i32
    return %arg0, %c0_i32, %arg1 : i32, i32, i32
  }
}

</mosaic_0001>

<bundles_post_ra>
// kernel: tpu_custom_call.1
= control target key start
LH: loop header
LB: loop body
LE: loop exit
PB: predicated region body
PF: predicated region fallthrough
CT: control target
= control target key end

     0   :  { %8 = vsyncpa [#allocation3], 0  ;;  %s1385_s0 = inlined_call_operand.hbm [shape: f32[2,64,768], index: 0, kind: input, shape index: {}]   ;;  %s1386_s1 = inlined_call_operand.vmem [shape: f32[128,64], index: 1, kind: input, shape index: {}]   ;;  %s1387_s2 = inlined_call_operand.vmem [shape: f32[128,1], index: 2, kind: input, shape index: {}]   ;;  %s1388_s3 = inlined_call_operand.hbm [shape: f32[2,128,768], index: 3, kind: output, shape index: {}]  }
   0x1   :  { %10 = vsyncpa [#allocation3 + $0x1], 0 }
   0x2   :  { %11 = vsyncpa [#allocation4], 0 }
   0x3   :  { %13 = vsyncpa [#allocation4 + $0x1], 0  ;;  %s990_s12 = smov 0   ;;  %s992_s13 = smov 0  }
   0x4   :  { %s994_s14 = smov 0   ;;  %s996_s15 = smov 0  }
   0x5   :  { %s998_s16 = smov 0   ;;  %s1000_s17 = smov 0  }
   0x6   :  { %s1002_s18 = smov 0   ;;  %s1004_s19 = smov 0  }
   0x7 LB: > { %s685_s20 = sadd.s32 4294967295, %s958_s19   ;;  %s686_s21 = sadd.s32 4294967294, %s958_s19   ;;  %s958_s19 = sphi %s1004_s19, %s19_s19   ;;  %s954_s18 = sphi %s1002_s18, %s1404_s18   ;;  %s950_s17 = sphi %s1000_s17, %s1403_s17   ;;  %s946_s16 = sphi %s998_s16, %s1402_s16   ;;  %s942_s15 = sphi %s996_s15, %s1401_s15   ;;  %s938_s14 = sphi %s994_s14, %s1400_s14   ;;  %s934_s13 = sphi %s992_s13, %s1399_s13   ;;  %s930_s12 = sphi %s990_s12, %s1398_s12  }
   0x8   : > { %s28_s22 = sadd.s32 1, %s950_s17  ;;  %s31_s23 = sadd.s32 1, %s954_s18 }
   0x9   : > { %p29_p0 = scmp.ge.s32.totalorder %s28_s22, 3  ;;  %s40_s24 = sadd.s32 1, %s938_s14 }
   0xa   : > { %p47_p1 = scmp.ne.s32.totalorder %s938_s14, %s934_s13  ;;  %p48_p2 = scmp.eq.s32.totalorder %s958_s19, 0 }
   0xb   : > { %s1406_s22 = smov (%p29_p0, %s28_s22), 0  ;;  %s1408_s23 = smov (!%p29_p0, %s31_s23), %s954_s18 }
   0xc   : > { %s36_s25 = ssub.s32 %s950_s17, %s1406_s22  ;;  %p1043_p3 = por %p48_p2, %p47_p1 }
   0xd   : > { %p33_p4 = scmp.ge.s32.totalorder %s1408_s23, 2  ;;  %p53_p5 = scmp.ne.s32.totalorder %s934_s13, %s930_s12 }
   0xe   : > { %p54_p6 = scmp.eq.s32.totalorder %s685_s20, 0  ;;  %p121_p7 = scmp.eq.s32.totalorder %s685_s20, 5 }
   0xf   : > { %s1410_s23 = smov (%p33_p4, %s1408_s23), 0  ;;  %p127_p10 = scmp.eq.s32.totalorder %s686_s21, 5 }
  0x10   : > { %p1051_p8 = por %p54_p6, %p53_p5  ;;  %p1055_p9 = por %p121_p7, %p47_p1 }
  0x11   : > { %s35_s29 = ssub.s32 %s954_s18, %s1410_s23  ;;  %p1061_p12 = por %p127_p10, %p53_p5 }
  0x12   : > { %s1392_s28 = scalar_select %p1055_p9, 1, 0 }
  0x13   : > { %s37_s30 = sor.u32 %s36_s25, %s35_s29  ;;  %p754_p13 = scmp.lt.s32.totalorder %s958_s19, 6 }
  0x14   : > { %p38_p11 = scmp.eq.s32.totalorder %s37_s30, 0  ;;  %s153_s5 = sand.u32 1, %s938_s14  }
  0x15   : > { %s1393_s4 = scalar_select %p1061_p12, 1, 0 }
  0x16   : > { %s1068_s6 = scalar_select %p38_p11, %s938_s14, %s40_s24  }
  0x17   : > { %s689_s7 = sshll.u32 %s153_s5, 7  ;;  %s690_s8 = sshll.u32 %s950_s17, 1 }
  0x18   : > { %s740_s9 = smul.u32 48, %s954_s18  ;;  %s157_s10 = scalar_lea.vmem [#allocation2], %s689_s7 }
  0x19   : > { %s166_s11 = sshll.u32 %s157_s10, 4  ;;  %p1076_p0 = pnand %p754_p13, %p1043_p3  ;;  %s1072_s11 = int_to_ptr.vmem [resolvable:$true] %s166_s11 }
  0x1a   : > { %s163_s21 = sadd.s32 %s740_s9, %s690_s8  ;;  %s1086_s7 = scalar_lea.sflag [#allocation3], %s153_s5 }
  0x1b   : > { %s691_s25 = sshll.u32 %s163_s21, 7  ;;  %p832_p3 = pneg %p1076_p0 }
  0x1c   : > { %s1083_s24 = scalar_lea.hbm %s1385_s0, %s691_s25  ;;  %s835_s10 = scalar_lea.hbm %s1385_s0, 12288 }
  0x1d   : > { %s830_s26 = scalar_lea.hbm %s1083_s24, 2048  ;;  %p836_p6 = scmp.lt.u32.totalorder %s1083_s24, %s1385_s0 }
  0x1e   : > { %p831_p2 = scmp.ne.s32.totalorder %s1083_s24, %s830_s26  ;;  %p837_p7 = scmp.lt.u32.totalorder %s835_s10, %s830_s26 }
  0x1f   : > { %p839_p11 = scmp.lt.u32.totalorder %s830_s26, %s1083_s24 }
  0x20   : > { %p833_p4 = pnand %p832_p3, %p831_p2  ;;  %p838_p10 = por %p837_p7, %p836_p6 }
  0x22   : > { %p834_p5 = pneg %p833_p4  ;;  %p840_p13 = por %p839_p11, %p838_p10 }
  0x24   : > { %p841_p1 = pnand %p840_p13, %p834_p5 }
  0x26   : > { %844 = shalt.err (!%p841_p1)
}
  0x27   : > { %s845_s5 = scalar_lea.vmem %s1072_s11, 2048  ;;  %s960_s29 = smov [#allocation2]  }
  0x28   : > { %p846_p2 = scmp.ne.s32.totalorder %s1072_s11, %s845_s5  ;;  %s850_s30 = sshll.u32 %s960_s29, 4  ;;  %s851_s30 = int_to_ptr.vmem [resolvable:$false] %s850_s30 }
  0x29   : > { %s852_s8 = scalar_lea.vmem %s851_s30, 4096  ;;  %p853_p9 = scmp.lt.s32.totalorder %s1072_s11, %s851_s30 }
  0x2a   : > { %p848_p4 = pnand %p846_p2, %p832_p3  ;;  %p854_p6 = scmp.lt.s32.totalorder %s852_s8, %s845_s5 }
  0x2c   : > { %p849_p12 = pneg %p848_p4  ;;  %p855_p7 = por %p854_p6, %p853_p9 }
  0x2e   : > { %p856_p10 = pnand %p855_p7, %p849_p12 }
  0x30   : > { %859 = shalt.err (!%p856_p10)
}
  0x31   : > { %s961_s26 = smov 768   ;;  %s962_s9 = smov 256  }
  0x32   : > { %s963_s10 = smov 16   ;;  %p174_p1 = scmp.lt.s32.totalorder %s958_s19, 7 }
  0x33   : > { %749 = dma.hbm_to_vmem [thread:$0]  (!%p1076_p0), %s1083_s24, 2048, %s1072_s11, %s1086_s7, %s961_s26, %s962_s9, %s963_s10  }
  0x34   : > { %p1395_p3 = scmp.ge.s32.totalorder %s958_s19, 1 }
  0x36   : > { %p175_p5 = pnand %p1395_p3, %p174_p1 }
  0x37   : > { %s1118_s21 = sand.u32 (!%p175_p5), 1, %s934_s13  }
  0x38   : > { %178 = sbr.rel (%p175_p5) target bundleno = 342 (0x156), region = 32  ;;  %s693_s25 = sshll.u32 (!%p175_p5), %s1118_s21, 7 }
  0x39   : > { %s181_s5 = scalar_lea.sflag (!%p175_p5), [#allocation3], %s1118_s21  ;;  %s1122_s29 = scalar_lea.vmem (!%p175_p5), [#allocation2], %s693_s25 }
  0x3f   : > { %921 = dma.done.wait (%p1051_p8), %s181_s5, 2048  }
  0x40   : > { %923 = vsyncadd (%p1051_p8), %s181_s5, 4294965248  ;;  %v964_v0 = vmov 0.0   ;;  %v965_v1 = vmov 0   ;;  %v226_v2 = vld [vmem:[%s1122_s29 + $0x8] sm:$0xff]  ;;  %v228_v3 = vld [vmem:[%s1122_s29 + $0x18] sm:$0xff]  ;;  %vm337_vm0 = vcmask 523264  }
  0x41   : > { %450 = vmatprep.mubr.f32.mxu0 %v964_v0  ;;  %498 = vmatprep.mubr.f32.mxu1 %v964_v0  ;;  %v225_v4 = vld [vmem:[%s1122_s29] sm:$0xff]  ;;  %v716_v5 = vpack.c.bf16 %v228_v3, %v226_v2  ;;  %v227_v6 = vld [vmem:[%s1122_s29 + $0x10] sm:$0xff]  ;;  %v230_v7 = vld [vmem:[%s1122_s29 + $0x28] sm:$0xff]  ;;  %s741_s11 = smul.u32 96, %s946_s16  ;;  %s712_s20 = sshll.u32 %s942_s15, 1 }
  0x42   : > { %829 = vset.pattern.permute.xlu1 %v965_v1  ;;  %828 = vset.pattern.permute.xlu0 %v965_v1  ;;  %v232_v8 = vld [vmem:[%s1122_s29 + $0x38] sm:$0xff]  ;;  %v718_v9 = vpack.c.bf16 %v227_v6, %v225_v4  ;;  %v229_v11 = vld [vmem:[%s1122_s29 + $0x20] sm:$0xff]  ;;  %v231_v12 = vld [vmem:[%s1122_s29 + $0x30] sm:$0xff]  ;;  %s580_s26 = scalar_lea.sflag [#allocation4], %s1118_s21  ;;  %p1396_p9 = scmp.ne.s32.totalorder %s1392_s28, 0 }
  0x43   : > { %v720_v10 = vpack.c.bf16 %v232_v8, %v230_v7  ;;  %v234_v13 = vld [vmem:[%s1122_s29 + $0x48] sm:$0xff]  ;;  %717 = vmatprep.subr.bf16.mxu0 %v716_v5  ;;  %732 = vmatprep.subr.bf16.mxu1 %v716_v5  ;;  %v236_v14 = vld [vmem:[%s1122_s29 + $0x58] sm:$0xff]  ;;  %v722_v15 = vpack.c.bf16 %v231_v12, %v229_v11  ;;  %v233_v17 = vld [vmem:[%s1122_s29 + $0x40] sm:$0xff]  ;;  %s592_s16 = sadd.s32 %s741_s11, %s712_s20  ;;  %s966_s10 = smov [#allocation5]  }
  0x44   : > { %719 = vmatpush1.bf16.msra.mxu0 %v718_v9  ;;  %736 = vmatpush1.bf16.msra.mxu1 %v718_v9  ;;  %v724_v16 = vpack.c.bf16 %v236_v14, %v234_v13  ;;  %v235_v18 = vld [vmem:[%s1122_s29 + $0x50] sm:$0xff]  ;;  %v238_v19 = vld [vmem:[%s1122_s29 + $0x68] sm:$0xff]  ;;  %v240_v20 = vld [vmem:[%s1122_s29 + $0x78] sm:$0xff]  ;;  %s713_s15 = sshll.u32 %s592_s16, 7  ;;  %s864_s25 = sshll.u32 %s966_s10, 4  ;;  %s865_s25 = int_to_ptr.vmem [resolvable:$false] %s864_s25 }
  0x45   : > { %721 = vmatprep.subr.bf16.mxu0 %v720_v10  ;;  %733 = vmatprep.subr.bf16.mxu1 %v720_v10  ;;  %v726_v21 = vpack.c.bf16 %v235_v18, %v233_v17  ;;  %v728_v22 = vpack.c.bf16 %v240_v20, %v238_v19  ;;  %v237_v23 = vld [vmem:[%s1122_s29 + $0x60] sm:$0xff]  ;;  %v239_v24 = vld [vmem:[%s1122_s29 + $0x70] sm:$0xff]  ;;  %v244_v28 = vld [vmem:[%s1387_s2 + $0x18] sm:$0xff]  ;;  %s694_s29 = sshll.u32 %s1118_s21, 8  ;;  %s1323_s8 = scalar_lea.hbm %s1388_s3, %s713_s15 }
  0x46   : > { %v243_v25 = vld [vmem:[%s1387_s2 + $0x10] sm:$0xff]  ;;  %v241_v26 = vld [vmem:[%s1387_s2] sm:$0xff]  ;;  %v730_v27 = vpack.c.bf16 %v239_v24, %v237_v23  ;;  %v242_v29 = vld [vmem:[%s1387_s2 + $0x8] sm:$0xff]  ;;  %s1281_s27 = scalar_lea.vmem [#allocation5], %s694_s29  ;;  %s866_s5 = scalar_lea.vmem %s865_s25, 8192 }
  0x47   : > { %269 = vperm.xlu1 %829, %v243_v25   ;;  %259 = vperm.xlu0 %828, %v241_v26   ;;  %v209_v30 = vld [vmem:[%s1386_s1] sm:$0xff]  ;;  %v246_v32 = vld [vmem:[%s1387_s2 + $0x28] sm:$0xff]  ;;  %v248_v36 = vld [vmem:[%s1387_s2 + $0x38] sm:$0xff]  ;;  %s595_s24 = sshll.u32 %s1281_s27, 4  ;;  %s1326_s24 = int_to_ptr.vmem [resolvable:$true] %s595_s24 }
  0x48   : > { %723 = vmatpush1.bf16.msra.mxu0 %v722_v15  ;;  %737 = vmatpush1.bf16.msra.mxu1 %v722_v15  ;;  %v217_v31 = vld [vmem:[%s1386_s1 + $0x40] sm:$0xff]  ;;  %v210_v34 = vld [vmem:[%s1386_s1 + $0x8] sm:$0xff]  ;;  %v247_v37 = vld [vmem:[%s1387_s2 + $0x30] sm:$0xff]  ;;  %s860_s9 = scalar_lea.vmem %s1326_s24, 4096  ;;  %p867_p11 = scmp.lt.s32.totalorder %s1326_s24, %s865_s25 }
  0x49   : > { %725 = vmatprep.subr.bf16.mxu0 %v724_v16  ;;  %734 = vmatprep.subr.bf16.mxu1 %v724_v16  ;;  %v245_v33 = vld [vmem:[%s1387_s2 + $0x20] sm:$0xff]  ;;  %v218_v35 = vld [vmem:[%s1386_s1 + $0x48] sm:$0xff]  ;;  %v211_v38 = vld [vmem:[%s1386_s1 + $0x10] sm:$0xff]  ;;  %p861_p8 = scmp.ne.s32.totalorder %s1326_s24, %s860_s9  ;;  %p868_p13 = scmp.lt.s32.totalorder %s866_s5, %s860_s9 }
  0x4a   : > { %v219_v39 = vld [vmem:[%s1386_s1 + $0x50] sm:$0xff]  ;;  %v250_v40 = vld [vmem:[%s1387_s2 + $0x48] sm:$0xff]  ;;  %v249_v41 = vld [vmem:[%s1387_s2 + $0x40] sm:$0xff] }
  0x4b   : > { %274 = vperm.xlu1 %829, %v244_v28   ;;  %264 = vperm.xlu0 %828, %v242_v29   ;;  %v212_v42 = vld [vmem:[%s1386_s1 + $0x18] sm:$0xff]  ;;  %v251_v45 = vld [vmem:[%s1387_s2 + $0x50] sm:$0xff]  ;;  %v213_v46 = vld [vmem:[%s1386_s1 + $0x20] sm:$0xff]  ;;  %p862_p12 = pnand %p861_p8, %p1396_p9  ;;  %p869_p2 = por %p868_p13, %p867_p11 }
  0x4c   : > { %727 = vmatpush1.bf16.msra.mxu0 %v726_v21  ;;  %738 = vmatpush1.bf16.msra.mxu1 %v726_v21  ;;  %v220_v43 = vld [vmem:[%s1386_s1 + $0x58] sm:$0xff]  ;;  %v221_v47 = vld [vmem:[%s1386_s1 + $0x60] sm:$0xff]  ;;  %v254_v48 = vld [vmem:[%s1387_s2 + $0x68] sm:$0xff] }
  0x4d   : > { %729 = vmatprep.subr.bf16.mxu0 %v728_v22  ;;  %735 = vmatprep.subr.bf16.mxu1 %v728_v22  ;;  %v252_v44 = vld [vmem:[%s1387_s2 + $0x58] sm:$0xff]  ;;  %v253_v49 = vld [vmem:[%s1387_s2 + $0x60] sm:$0xff]  ;;  %v214_v50 = vld [vmem:[%s1386_s1 + $0x28] sm:$0xff]  ;;  %p863_p0 = pneg %p862_p12 }
  0x4e   : > { %v222_v51 = vld [vmem:[%s1386_s1 + $0x68] sm:$0xff]  ;;  %v256_v52 = vld [vmem:[%s1387_s2 + $0x78] sm:$0xff]  ;;  %v255_v53 = vld [vmem:[%s1387_s2 + $0x70] sm:$0xff] }
  0x4f   : > { %284 = vperm.xlu1 %829, %v246_v32   ;;  %279 = vperm.xlu0 %828, %v245_v33   ;;  %v215_v54 = vld [vmem:[%s1386_s1 + $0x30] sm:$0xff]  ;;  %v216_v56 = vld [vmem:[%s1386_s1 + $0x38] sm:$0xff]  ;;  %p870_p4 = pnand %p869_p2, %p863_p0 }
  0x50   : > { %731 = vmatpush1.bf16.msra.mxu0 %v730_v27  ;;  %739 = vmatpush1.bf16.msra.mxu1 %v730_v27  ;;  %v223_v55 = vld [vmem:[%s1386_s1 + $0x70] sm:$0xff]  ;;  %v224_v57 = vld [vmem:[%s1386_s1 + $0x78] sm:$0xff] }
  0x53   : > { %695 = vmatmul.mubr.msk.f32.vlgmr.msra.gmra.mrb[0].mxu0 %vm337_vm0, %v209_v30  ;;  %703 = vmatmul.mubr.msk.f32.vlgmr.msra.gmra.mrb[0].mxu1 %vm337_vm0, %v217_v31 }
  0x54   : > { %456 = vmatprep.mubr.f32.mxu0 %v964_v0  ;;  %504 = vmatprep.mubr.f32.mxu1 %v964_v0 }
  0x55   : > { %294 = vperm.xlu1 %829, %v248_v36   ;;  %289 = vperm.xlu0 %828, %v247_v37  }
  0x57   : > { %696 = vmatmul.mubr.msk.f32.gmra.mrb[2].mxu0 %vm337_vm0, %v210_v34  ;;  %704 = vmatmul.mubr.msk.f32.gmra.mrb[2].mxu1 %vm337_vm0, %v218_v35 }
  0x58   : > { %462 = vmatprep.mubr.f32.mxu0 %v964_v0  ;;  %510 = vmatprep.mubr.f32.mxu1 %v964_v0 }
  0x59   : > { %304 = vperm.xlu1 %829, %v250_v40   ;;  %299 = vperm.xlu0 %828, %v249_v41  }
  0x5b   : > { %697 = vmatmul.mubr.msk.f32.gmra.mrb[4].mxu0 %vm337_vm0, %v211_v38  ;;  %705 = vmatmul.mubr.msk.f32.gmra.mrb[4].mxu1 %vm337_vm0, %v219_v39 }
  0x5c   : > { %468 = vmatprep.mubr.f32.mxu0 %v964_v0  ;;  %516 = vmatprep.mubr.f32.mxu1 %v964_v0 }
  0x5d   : > { %314 = vperm.xlu1 %829, %v252_v44   ;;  %309 = vperm.xlu0 %828, %v251_v45  }
  0x5f   : > { %698 = vmatmul.mubr.msk.f32.gmra.mrb[6].mxu0 %vm337_vm0, %v212_v42  ;;  %706 = vmatmul.mubr.msk.f32.gmra.mrb[6].mxu1 %vm337_vm0, %v220_v43 }
  0x60   : > { %474 = vmatprep.mubr.f32.mxu0 %v964_v0  ;;  %522 = vmatprep.mubr.f32.mxu1 %v964_v0 }
  0x61   : > { %324 = vperm.xlu1 %829, %v254_v48   ;;  %319 = vperm.xlu0 %828, %v253_v49  }
  0x63   : > { %699 = vmatmul.mubr.msk.f32.gmra.mrb[8].mxu0 %vm337_vm0, %v213_v46  ;;  %707 = vmatmul.mubr.msk.f32.gmra.mrb[8].mxu1 %vm337_vm0, %v221_v47 }
  0x64   : > { %480 = vmatprep.mubr.f32.mxu0 %v964_v0  ;;  %528 = vmatprep.mubr.f32.mxu1 %v964_v0 }
  0x65   : > { %334 = vperm.xlu1 %829, %v256_v52   ;;  %329 = vperm.xlu0 %828, %v255_v53  }
  0x67   : > { %700 = vmatmul.mubr.msk.f32.gmra.mrb[10].mxu0 %vm337_vm0, %v214_v50  ;;  %708 = vmatmul.mubr.msk.f32.gmra.mrb[10].mxu1 %vm337_vm0, %v222_v51 }
  0x68   : > { %486 = vmatprep.mubr.f32.mxu0 %v964_v0  ;;  %534 = vmatprep.mubr.f32.mxu1 %v964_v0 }
  0x6b   : > { %701 = vmatmul.mubr.msk.f32.gmra.mrb[12].mxu0 %vm337_vm0, %v215_v54  ;;  %709 = vmatmul.mubr.msk.f32.gmra.mrb[12].mxu1 %vm337_vm0, %v223_v55 }
  0x6c   : > { %492 = vmatprep.mubr.f32.mxu0 %v964_v0  ;;  %540 = vmatprep.mubr.f32.mxu1 %v964_v0 }
  0x6f   : > { %702 = vmatmul.mubr.msk.f32.gmra.mrb[14].mxu0 %vm337_vm0, %v216_v56  ;;  %710 = vmatmul.mubr.msk.f32.gmra.mrb[14].mxu1 %vm337_vm0, %v224_v57 }
  0xc6   : > { %v260_v58 = vpop.permute.xlu0 %259  ;;  %v270_v59 = vpop.permute.xlu1 %269 }
  0xca   : > { %v265_v60 = vpop.permute.xlu0 %264  ;;  %v275_v61 = vpop.permute.xlu1 %274 }
  0xce   : > { %v1272_v62 = vpop.permute.xlu0 %279  ;;  %v1274_v63 = vpop.permute.xlu1 %284 }
  0xd4   : > { %v1276_v0 = vpop.permute.xlu0 %289  ;;  %v1278_v1 = vpop.permute.xlu1 %294 }
  0xd8   : > { %v300_v2 = vpop.permute.xlu0 %299  ;;  %v305_v11 = vpop.permute.xlu1 %304 }
  0xdc   : > { %v310_v20 = vpop.permute.xlu0 %309  ;;  %v315_v29 = vpop.permute.xlu1 %314 }
  0xe0   : > { %v320_v38 = vpop.permute.xlu0 %319  ;;  %v325_v47 = vpop.permute.xlu1 %324 }
  0xe4   : > { %v330_v56 = vpop.permute.xlu0 %329 }
 0x126   : > { %v452_v3 = vpop.f32.mrb[0].mxu0  ;;  %v500_v4 = vpop.f32.mrb[0].mxu1 }
 0x127   : > { %v453_v5 = vadd.f32 %v452_v3, %v260_v58  ;;  %v501_v6 = vadd.f32 %v500_v4, %v300_v2  ;;  %v454_v7 = vpop.f32.mrb[1].mxu0  ;;  %v502_v8 = vpop.f32.mrb[1].mxu1 }
 0x128   : > { %v455_v9 = vadd.f32 %v454_v7, %v260_v58  ;;  %v503_v10 = vadd.f32 %v502_v8, %v300_v2  ;;  %v335_v3 = vpop.permute.xlu1 %334 }
 0x129   : > { %547 = vst [vmem:[%s1281_s27] sm:$0xff] %v453_v5  ;;  %563 = vst [vmem:[%s1281_s27 + $0x80] sm:$0xff] %v501_v6 }
 0x12a   : > { %548 = vst [vmem:[%s1281_s27 + $0x8] sm:$0xff] %v455_v9  ;;  %564 = vst [vmem:[%s1281_s27 + $0x88] sm:$0xff] %v503_v10  ;;  %v458_v12 = vpop.f32.mrb[2].mxu0  ;;  %v506_v13 = vpop.f32.mrb[2].mxu1 }
 0x12b   : > { %v459_v14 = vadd.f32 %v458_v12, %v265_v60  ;;  %v507_v15 = vadd.f32 %v506_v13, %v305_v11  ;;  %v460_v16 = vpop.f32.mrb[3].mxu0  ;;  %v508_v17 = vpop.f32.mrb[3].mxu1 }
 0x12c   : > { %v461_v18 = vadd.f32 %v460_v16, %v265_v60  ;;  %v509_v19 = vadd.f32 %v508_v17, %v305_v11 }
 0x12d   : > { %549 = vst [vmem:[%s1281_s27 + $0x10] sm:$0xff] %v459_v14  ;;  %565 = vst [vmem:[%s1281_s27 + $0x90] sm:$0xff] %v507_v15 }
 0x12e   : > { %550 = vst [vmem:[%s1281_s27 + $0x18] sm:$0xff] %v461_v18  ;;  %566 = vst [vmem:[%s1281_s27 + $0x98] sm:$0xff] %v509_v19  ;;  %v464_v21 = vpop.f32.mrb[4].mxu0  ;;  %v512_v22 = vpop.f32.mrb[4].mxu1 }
 0x12f   : > { %v465_v23 = vadd.f32 %v464_v21, %v270_v59  ;;  %v513_v24 = vadd.f32 %v512_v22, %v310_v20  ;;  %v466_v25 = vpop.f32.mrb[5].mxu0  ;;  %v514_v26 = vpop.f32.mrb[5].mxu1 }
 0x130   : > { %v467_v27 = vadd.f32 %v466_v25, %v270_v59  ;;  %v515_v28 = vadd.f32 %v514_v26, %v310_v20 }
 0x131   : > { %551 = vst [vmem:[%s1281_s27 + $0x20] sm:$0xff] %v465_v23  ;;  %567 = vst [vmem:[%s1281_s27 + $0xa0] sm:$0xff] %v513_v24 }
 0x132   : > { %552 = vst [vmem:[%s1281_s27 + $0x28] sm:$0xff] %v467_v27  ;;  %568 = vst [vmem:[%s1281_s27 + $0xa8] sm:$0xff] %v515_v28  ;;  %v470_v30 = vpop.f32.mrb[6].mxu0  ;;  %v518_v31 = vpop.f32.mrb[6].mxu1 }
 0x133   : > { %v471_v32 = vadd.f32 %v470_v30, %v275_v61  ;;  %v519_v33 = vadd.f32 %v518_v31, %v315_v29  ;;  %v472_v34 = vpop.f32.mrb[7].mxu0  ;;  %v520_v35 = vpop.f32.mrb[7].mxu1 }
 0x134   : > { %v473_v36 = vadd.f32 %v472_v34, %v275_v61  ;;  %v521_v37 = vadd.f32 %v520_v35, %v315_v29 }
 0x135   : > { %553 = vst [vmem:[%s1281_s27 + $0x30] sm:$0xff] %v471_v32  ;;  %569 = vst [vmem:[%s1281_s27 + $0xb0] sm:$0xff] %v519_v33 }
 0x136   : > { %554 = vst [vmem:[%s1281_s27 + $0x38] sm:$0xff] %v473_v36  ;;  %570 = vst [vmem:[%s1281_s27 + $0xb8] sm:$0xff] %v521_v37  ;;  %v476_v39 = vpop.f32.mrb[8].mxu0  ;;  %v524_v40 = vpop.f32.mrb[8].mxu1 }
 0x137   : > { %v477_v41 = vadd.f32 %v476_v39, %v1272_v62  ;;  %v525_v42 = vadd.f32 %v524_v40, %v320_v38  ;;  %v478_v43 = vpop.f32.mrb[9].mxu0  ;;  %v526_v44 = vpop.f32.mrb[9].mxu1 }
 0x138   : > { %v479_v45 = vadd.f32 %v478_v43, %v1272_v62  ;;  %v527_v46 = vadd.f32 %v526_v44, %v320_v38 }
 0x139   : > { %555 = vst [vmem:[%s1281_s27 + $0x40] sm:$0xff] %v477_v41  ;;  %571 = vst [vmem:[%s1281_s27 + $0xc0] sm:$0xff] %v525_v42 }
 0x13a   : > { %556 = vst [vmem:[%s1281_s27 + $0x48] sm:$0xff] %v479_v45  ;;  %572 = vst [vmem:[%s1281_s27 + $0xc8] sm:$0xff] %v527_v46  ;;  %v482_v48 = vpop.f32.mrb[10].mxu0  ;;  %v530_v49 = vpop.f32.mrb[10].mxu1 }
 0x13b   : > { %v483_v50 = vadd.f32 %v482_v48, %v1274_v63  ;;  %v531_v51 = vadd.f32 %v530_v49, %v325_v47  ;;  %v484_v52 = vpop.f32.mrb[11].mxu0  ;;  %v532_v53 = vpop.f32.mrb[11].mxu1 }
 0x13c   : > { %v485_v54 = vadd.f32 %v484_v52, %v1274_v63  ;;  %v533_v55 = vadd.f32 %v532_v53, %v325_v47 }
 0x13d   : > { %557 = vst [vmem:[%s1281_s27 + $0x50] sm:$0xff] %v483_v50  ;;  %573 = vst [vmem:[%s1281_s27 + $0xd0] sm:$0xff] %v531_v51 }
 0x13e   : > { %558 = vst [vmem:[%s1281_s27 + $0x58] sm:$0xff] %v485_v54  ;;  %574 = vst [vmem:[%s1281_s27 + $0xd8] sm:$0xff] %v533_v55  ;;  %v488_v57 = vpop.f32.mrb[12].mxu0  ;;  %v536_v58 = vpop.f32.mrb[12].mxu1 }
 0x13f   : > { %v489_v59 = vadd.f32 %v488_v57, %v1276_v0  ;;  %v537_v60 = vadd.f32 %v536_v58, %v330_v56  ;;  %v490_v61 = vpop.f32.mrb[13].mxu0  ;;  %v538_v62 = vpop.f32.mrb[13].mxu1 }
 0x140   : > { %v491_v63 = vadd.f32 %v490_v61, %v1276_v0  ;;  %v539_v2 = vadd.f32 %v538_v62, %v330_v56 }
 0x141   : > { %559 = vst [vmem:[%s1281_s27 + $0x60] sm:$0xff] %v489_v59  ;;  %575 = vst [vmem:[%s1281_s27 + $0xe0] sm:$0xff] %v537_v60 }
 0x142   : > { %560 = vst [vmem:[%s1281_s27 + $0x68] sm:$0xff] %v491_v63  ;;  %576 = vst [vmem:[%s1281_s27 + $0xe8] sm:$0xff] %v539_v2  ;;  %v494_v4 = vpop.f32.mrb[14].mxu0  ;;  %v542_v5 = vpop.f32.mrb[14].mxu1 }
 0x143   : > { %v495_v0 = vadd.f32 %v494_v4, %v1278_v1  ;;  %v543_v6 = vadd.f32 %v542_v5, %v335_v3  ;;  %v496_v7 = vpop.f32.mrb[15].mxu0  ;;  %v544_v8 = vpop.f32.mrb[15].mxu1 }
 0x144   : > { %v497_v9 = vadd.f32 %v496_v7, %v1278_v1  ;;  %v545_v10 = vadd.f32 %v544_v8, %v335_v3 }
 0x145   : > { %561 = vst [vmem:[%s1281_s27 + $0x70] sm:$0xff] %v495_v0  ;;  %577 = vst [vmem:[%s1281_s27 + $0xf0] sm:$0xff] %v543_v6 }
 0x146   : > { %562 = vst [vmem:[%s1281_s27 + $0x78] sm:$0xff] %v497_v9  ;;  %578 = vst [vmem:[%s1281_s27 + $0xf8] sm:$0xff] %v545_v10 }
 0x147   : > { %873 = shalt.err (!%p870_p4)
}
 0x148   : > { %s874_s29 = scalar_lea.hbm %s1323_s8, 4096  ;;  %s878_s20 = scalar_lea.hbm %s1388_s3, 24576 }
 0x149   : > { %p875_p6 = scmp.ne.s32.totalorder %s1323_s8, %s874_s29  ;;  %p879_p1 = scmp.lt.u32.totalorder %s1323_s8, %s1388_s3 }
 0x14a   : > { %p880_p3 = scmp.lt.u32.totalorder %s878_s20, %s874_s29  ;;  %p882_p8 = scmp.lt.u32.totalorder %s874_s29, %s1323_s8 }
 0x14b   : > { %p876_p7 = pnand %p875_p6, %p1396_p9 }
 0x14c   : > { %p881_p5 = por %p880_p3, %p879_p1 }
 0x14d   : > { %p877_p10 = pneg %p876_p7 }
 0x14e   : > { %p883_p12 = por %p882_p8, %p881_p5 }
 0x150   : > { %p884_p0 = pnand %p883_p12, %p877_p10 }
 0x152   : > { %887 = shalt.err (!%p884_p0)
}
 0x153   : > { %s967_s7 = smov 256   ;;  %s968_s30 = smov 768  }
 0x154   : > { %s969_s9 = smov 16  }
 0x155   : > { %744 = dma.vmem_to_hbm [thread:$0]  (%p1396_p9), %s1326_s24, 4096, %s1323_s8, %s580_s26, %s967_s7, %s968_s30, %s969_s9  }
 0x156 PF: > { %p755_p11 = scmp.ge.s32.totalorder %s958_s19, 2  ;;  %s610_s10 = sand.u32 1, %s930_s12  }
 0x157   : > { %p1397_p13 = scmp.ne.s32.totalorder %s1393_s4, 0  ;;  %s611_s25 = scalar_lea.sflag [#allocation4], %s610_s10 }
 0x159   : > { %p751_p2 = pnand %p755_p11, %p1397_p13 }
 0x15b   : > { %925 = dma.done.wait (!%p751_p2), %s611_s25, 4096  }
 0x15c   : > { %927 = vsyncadd (!%p751_p2), %s611_s25, 4294963200  ;;  %s19_s19 = sadd.s32 1, %s958_s19   ;;  %s1398_s12 = smov %s934_s13 }
 0x15d   : > { %p16_p4 = scmp.ge.s32.totalorder %s19_s19, 8   ;;  %s1399_s13 = smov %s938_s14 }
 0x15e   : > { %s1400_s14 = smov %s1068_s6  ;;  %s1401_s15 = smov %s950_s17 }
 0x15f   : > { %s1402_s16 = smov %s954_s18  ;;  %s1403_s17 = smov %s1406_s22 }
 0x160   : > { %s1404_s18 = smov %s1410_s23  ;;  %18 = sbr.rel (!%p16_p4) target bundleno = 7 (0x7), region = 77 }
 0x167   :  { %616 = vsyncpa [#allocation3], 1 }
 0x168   :  { %618 = vsyncpa [#allocation3 + $0x1], 1 }
 0x169   :  { %619 = vsyncpa [#allocation4], 1 }
 0x16a   :  { %621 = vsyncpa [#allocation4 + $0x1], 1 }

</bundles_post_ra>
